<compile_context>
chip_gen: v7x
topology: tpu7x:2x2x1
jax: 0.10.0
libtpu: 0.0.40
codegen_flags: <defaults>
</compile_context>

<pallas_src>
import jax
import jax.numpy as jnp
from jax.experimental import pallas as pl
from jax.experimental.pallas import tpu as pltpu


# ----------------------------- FFT glue (plain JAX) -----------------------------
# TODO(synk): the orthonormal 2-D FFT has no clean Pallas equivalent; the is_img
# path wraps jnp.fft around the Pallas data-consistency kernel.
def fft2c(x):
    # x: (N, 2, H, W); channel pair == (real, imag)
    c = x[:, 0].astype(jnp.complex64) + 1j * x[:, 1].astype(jnp.complex64)
    c = jnp.fft.fft2(c, norm="ortho")
    return jnp.stack([jnp.real(c), jnp.imag(c)], axis=1).astype(x.dtype)


def ifft2c(x):
    c = x[:, 0].astype(jnp.complex64) + 1j * x[:, 1].astype(jnp.complex64)
    c = jnp.fft.ifft2(c, norm="ortho")
    return jnp.stack([jnp.real(c), jnp.imag(c)], axis=1).astype(x.dtype)


# ----------------------------- Pallas kernel -----------------------------------
def _dc_kernel(b_ref, rec_ref, uk_ref, mask_ref, out_ref):
    # b_ref: (1,) f32 SMEM scalar, b = 1/(1+w).  a = w/(1+w) = 1 - b, so the exact
    # DC update is  out = rec + mask*b*(u_k - rec)  for any mask value.
    b = b_ref[0]
    rec = rec_ref[...].astype(jnp.float32)
    uk = uk_ref[...].astype(jnp.float32)
    m = mask_ref[...].astype(jnp.float32)  # (1, tc) broadcasts over rows, or full tile
    out_ref[...] = (rec + (m * b) * (uk - rec)).astype(out_ref.dtype)


# ----------------------------- Tiling helpers -----------------------------------
def _largest_divisor(n, align, cap):
    """Largest multiple of `align` that divides n and is <= cap; else n (full dim)."""
    if n < align or n % align != 0:
        return n
    best = align
    d = align
    limit = min(n, max(cap, align))
    while d <= limit:
        if n % d == 0:
            best = d
        d += align
    return best


def _tpu_budget():
    """(per-stream tile byte budget, vmem_limit clamp, min grid blocks wanted)."""
    vmem_cap = None
    try:
        vmem_cap = int(pltpu.get_tpu_info().vmem_capacity_bytes)
    except Exception:
        vmem_cap = None
    if vmem_cap is not None and vmem_cap > (64 << 20):
        # v5e / v6e class: 128 MiB physical VMEM, single TensorCore.
        return 8 << 20, 100 << 20, 2
    # v7x class (64 MiB VMEM, 2 TCs) -- also the safe fallback if the query fails.
    return 4 << 20, 44 << 20, 4


# ----------------------------- Pallas wrappers -----------------------------------
def _dc_pallas_2d(rec2, uk2, mask2, b_arr):
    """rec2/uk2: (rows, cols); mask2: (1, cols) shared or (rows, cols) full."""
    rows, cols = rec2.shape
    itemsize = rec2.dtype.itemsize
    align_r = 8 if itemsize >= 4 else 16
    max_tile_bytes, vmem_clamp, want_blocks = _tpu_budget()

    # Lane-dense column tile first; the cap comes from the per-stream byte budget
    # and the (usually tiny) row count, not a fixed constant.
    r_est = rows if rows < 128 else 128
    cap_c = max(128, max_tile_bytes // max(r_est * itemsize, 1))
    tile_c = _largest_divisor(cols, 128, cap_c)
    row_cap = max(align_r, max_tile_bytes // max(tile_c * itemsize, 1))
    tile_r = _largest_divisor(rows, align_r, row_cap)

    n_rb, n_cb = rows // tile_r, cols // tile_c
    # Keep at least a few blocks on a parallel axis (megacore on v7x, and
    # double-buffer overlap everywhere) when the array is big enough to matter.
    if (n_rb * n_cb < want_blocks
            and rows * cols * itemsize >= want_blocks * (512 << 10)):
        cand = _largest_divisor(
            cols, 128, max(128, cols // max(want_blocks // max(n_rb, 1), 1)))
        if cand < tile_c:
            tile_c = cand
            n_cb = cols // tile_c

    # Columns on the OUTER grid axis: for a shared mask the mask block index is
    # constant across the inner (row) loop, so its DMA is not re-issued per step.
    grid = (n_cb, n_rb)
    data_spec = pl.BlockSpec((tile_r, tile_c), lambda j, i: (i, j))
    if mask2.shape[0] == 1:
        mask_spec = pl.BlockSpec((1, tile_c), lambda j, i: (0, j))
        mask_rows = 1
    else:
        mask_spec = data_spec
        mask_rows = tile_r

    tile_bytes = tile_r * tile_c * itemsize
    vmem_need = 2 * (3 * tile_bytes + mask_rows * tile_c * itemsize) + (2 << 20)
    vmem_limit = int(min(max(vmem_need, 16 << 20), vmem_clamp))

    return pl.pallas_call(
        _dc_kernel,
        out_shape=jax.ShapeDtypeStruct((rows, cols), rec2.dtype),
        grid=grid,
        in_specs=[
            pl.BlockSpec(memory_space=pltpu.MemorySpace.SMEM),  # b scalar
            data_spec,                                          # rec
            data_spec,                                          # u_k
            mask_spec,                                          # mask
        ],
        out_specs=data_spec,
        compiler_params=pltpu.CompilerParams(
            dimension_semantics=("parallel", "parallel"),
            vmem_limit_bytes=vmem_limit,
        ),
    )(b_arr, rec2, uk2, mask2)


def _dc_pallas_3d(rec3, uk3, mask3, b_arr):
    """rec3/uk3: (N, C, cols); mask3: (N, 1, cols) — per-batch mask, shared over C."""
    n, c, cols = rec3.shape
    itemsize = rec3.dtype.itemsize
    max_tile_bytes, vmem_clamp, want_blocks = _tpu_budget()

    cap_c = max(128, max_tile_bytes // max(c * itemsize, 1))
    tile_c = _largest_divisor(cols, 128, cap_c)
    n_cb = cols // tile_c
    if (n * n_cb < want_blocks
            and n * c * cols * itemsize >= want_blocks * (512 << 10)):
        cand = _largest_divisor(
            cols, 128, max(128, cols // max(want_blocks // max(n, 1), 1)))
        if cand < tile_c:
            tile_c = cand
            n_cb = cols // tile_c

    grid = (n_cb, n)
    # Leading (batch) dim is squeezed: the kernel sees (C, tile_c) data tiles and a
    # (1, tile_c) mask tile that broadcasts over the coil/channel rows in-register.
    data_spec = pl.BlockSpec((None, c, tile_c), lambda j, bi: (bi, 0, j))
    mask_spec = pl.BlockSpec((None, 1, tile_c), lambda j, bi: (bi, 0, j))

    tile_bytes = c * tile_c * itemsize
    vmem_need = 2 * (3 * tile_bytes + tile_c * itemsize) + (2 << 20)
    vmem_limit = int(min(max(vmem_need, 16 << 20), vmem_clamp))

    return pl.pallas_call(
        _dc_kernel,
        out_shape=jax.ShapeDtypeStruct((n, c, cols), rec3.dtype),
        grid=grid,
        in_specs=[
            pl.BlockSpec(memory_space=pltpu.MemorySpace.SMEM),
            data_spec,
            data_spec,
            mask_spec,
        ],
        out_specs=data_spec,
        compiler_params=pltpu.CompilerParams(
            dimension_semantics=("parallel", "parallel"),
            vmem_limit_bytes=vmem_limit,
        ),
    )(b_arr, rec3, uk3, mask3)


# ----------------------------- Module wrapper -----------------------------------
class DC:
    """Forward-only DC block (w fixed at its PyTorch init value 0.1)."""
    # TODO(synk): pallas_call has no autodiff rule; training w would need custom_vjp.

    def __init__(self, w=0.1):
        self.w = jnp.float32(w)

    def __call__(self, rec, u_k, mask, is_img=False):
        if is_img:
            rec = fft2c(rec)

        N, C, H, W = rec.shape
        HW = H * W
        dtype = rec.dtype
        u_k = jnp.asarray(u_k, dtype)
        mask = jnp.asarray(mask, dtype)

        # b = 1/(1+w): single SMEM scalar for the kernel.
        b_arr = (1.0 / (1.0 + jnp.asarray(self.w, jnp.float32))).reshape(1)

        if mask.size == HW:
            # Sampling pattern shared across batch & coil (e.g. (H,W) or (1,1,H,W)).
            out = _dc_pallas_2d(rec.reshape(N * C, HW),
                                u_k.reshape(N * C, HW),
                                mask.reshape(1, HW), b_arr)
        elif mask.size == N * HW and C > 1:
            # Per-batch pattern, shared across coils/channels (e.g. (N,1,H,W)):
            # no HBM broadcast — mask stays at its native size.
            out = _dc_pallas_3d(rec.reshape(N, C, HW),
                                u_k.reshape(N, C, HW),
                                mask.reshape(N, 1, HW), b_arr)
        else:
            # Mask already matches (or must be expanded to) the full data shape.
            mask_full = jnp.broadcast_to(mask, rec.shape)   # no-op when shapes match
            out = _dc_pallas_2d(rec.reshape(N * C, HW),
                                u_k.reshape(N * C, HW),
                                mask_full.reshape(N * C, HW), b_arr)

        out = out.reshape(rec.shape)
        if is_img:
            out = ifft2c(out)
        return out


# ----------------------------- Reference (pure JAX) ------------------------------
def dc_ref(rec, u_k, mask, w, is_img=False):
    if is_img:
        rec = fft2c(rec)
    res = mask * (rec * w / (1.0 + w) + u_k * (1.0 / (1.0 + w)))
    res = res + (1.0 - mask) * rec
    if is_img:
        res = ifft2c(res)
    return res


def _check(out, ref, atol):
    out = jnp.asarray(out, jnp.float32)
    ref = jnp.asarray(ref, jnp.float32)
    err = float(jnp.max(jnp.abs(out - ref)))
    assert err <= atol, f"max abs error {err} > {atol}"


# ----------------------------- Self-test -----------------------------------------
if __name__ == "__main__":
    dc = DC()
    key = jax.random.PRNGKey(0)
    k1, k2, k3, k4, k5, k6, k7, k8, k9 = jax.random.split(key, 9)

    # Case 1: canonical small shape, sampling mask shared across batch & coil.
    shape = (2, 2, 16, 16)
    rec = jax.random.normal(k1, shape, jnp.float32)
    u_k = jax.random.normal(k2, shape, jnp.float32)
    mask = (jax.random.uniform(k3, (1, 1, 16, 16)) > 0.5).astype(jnp.float32)
    out = jax.block_until_ready(dc(rec, u_k, mask, is_img=False))
    _check(out, dc_ref(rec, u_k, jnp.broadcast_to(mask, shape), dc.w), 1e-5)
    out_img = jax.block_until_ready(dc(rec, u_k, mask, is_img=True))
    _check(out_img,
           dc_ref(rec, u_k, jnp.broadcast_to(mask, shape), dc.w, is_img=True), 1e-4)

    # Case 2: per-batch mask shared across coils -> 3-D route (no HBM broadcast).
    shape = (2, 4, 64, 128)
    rec = jax.random.normal(k4, shape, jnp.float32)
    u_k = jax.random.normal(k5, shape, jnp.float32)
    mask = (jax.random.uniform(k6, (2, 1, 64, 128)) > 0.5).astype(jnp.float32)
    out = jax.block_until_ready(dc(rec, u_k, mask, is_img=False))
    _check(out, dc_ref(rec, u_k, jnp.broadcast_to(mask, shape), dc.w), 1e-5)

    # Case 3: fully per-element mask (same shape as the data).
    shape = (2, 2, 32, 128)
    rec = jax.random.normal(k7, shape, jnp.float32)
    u_k = jax.random.normal(k8, shape, jnp.float32)
    mask = (jax.random.uniform(k9, shape) > 0.5).astype(jnp.float32)
    out = jax.block_until_ready(dc(rec, u_k, mask, is_img=False))
    _check(out, dc_ref(rec, u_k, mask, dc.w), 1e-5)

    # Case 4: bf16 inputs (halves HBM traffic; kernel computes in f32 internally).
    rec_h = rec.astype(jnp.bfloat16)
    uk_h = u_k.astype(jnp.bfloat16)
    mask_shared = mask[:1, :1]                       # (1,1,32,128) shared mask
    out_h = jax.block_until_ready(dc(rec_h, uk_h, mask_shared, is_img=False))
    ref_h = dc_ref(rec_h.astype(jnp.float32), uk_h.astype(jnp.float32),
                   jnp.broadcast_to(mask_shared, shape).astype(jnp.float32), dc.w)
    _check(out_h, ref_h, 5e-2)

    print("KERNEL_OK")
</pallas_src>

<mosaic_0001>
module attributes {stable_mosaic.version = 11 : i64} {
  func.func @_dc_kernel(%arg0: i32, %arg1: i32, %arg2: memref<1xf32, #tpu.memory_space<smem>>, %arg3: memref<4x256xf32, #tpu.memory_space<vmem>>, %arg4: memref<4x256xf32, #tpu.memory_space<vmem>>, %arg5: memref<1x256xf32, #tpu.memory_space<vmem>>, %arg6: memref<4x256xf32, #tpu.memory_space<vmem>>) attributes {dimension_semantics = [#tpu.dimension_semantics<parallel>, #tpu.dimension_semantics<parallel>], iteration_bounds = array<i64: 1, 1>, scalar_prefetch = 0 : i64, scratch_operands = 0 : i64, tpu.core_type = #tpu.core_type<tc>, window_params = [{transform_indices = @transform_0, window_bounds = array<i64: 1>}, {transform_indices = @transform_1, window_bounds = array<i64: 4, 256>}, {transform_indices = @transform_2, window_bounds = array<i64: 4, 256>}, {transform_indices = @transform_3, window_bounds = array<i64: 1, 256>}, {transform_indices = @transform_4, window_bounds = array<i64: 4, 256>}]} {
    %c0 = arith.constant 0 : index
    %0 = memref.load %arg2[%c0] : memref<1xf32, #tpu.memory_space<smem>>
    %c0_0 = arith.constant 0 : index
    %c0_1 = arith.constant 0 : index
    %1 = vector.load %arg3[%c0_0, %c0_1] : memref<4x256xf32, #tpu.memory_space<vmem>>, vector<4x256xf32>
    %c0_2 = arith.constant 0 : index
    %c0_3 = arith.constant 0 : index
    %2 = vector.load %arg4[%c0_2, %c0_3] : memref<4x256xf32, #tpu.memory_space<vmem>>, vector<4x256xf32>
    %c0_4 = arith.constant 0 : index
    %c0_5 = arith.constant 0 : index
    %3 = vector.load %arg5[%c0_4, %c0_5] : memref<1x256xf32, #tpu.memory_space<vmem>>, vector<1x256xf32>
    %4 = vector.broadcast %0 : f32 to vector<1x256xf32>
    %5 = arith.mulf %3, %4 : vector<1x256xf32>
    %6 = arith.subf %2, %1 : vector<4x256xf32>
    %7 = vector.broadcast %5 : vector<1x256xf32> to vector<4x256xf32>
    %8 = arith.mulf %7, %6 : vector<4x256xf32>
    %9 = arith.addf %1, %8 : vector<4x256xf32>
    %c0_6 = arith.constant 0 : index
    %c0_7 = arith.constant 0 : index
    %10 = vector.load %arg6[%c0_6, %c0_7] : memref<4x256xf32, #tpu.memory_space<vmem>>, vector<4x256xf32>
    tpu.vector_store %arg6[%c0_6, %c0_7], %9 {strides = array<i32>} : memref<4x256xf32, #tpu.memory_space<vmem>>, vector<4x256xf32>,
    return
  }
  func.func @transform_0(%arg0: i32, %arg1: i32) -> i32 {
    %c0_i32 = arith.constant 0 : i32
    %c0_i32_0 = arith.constant 0 : i32
    return %c0_i32 : i32
  }
  func.func @transform_1(%arg0: i32, %arg1: i32) -> (i32, i32) {
    %c0_i32 = arith.constant 0 : i32
    return %arg1, %arg0 : i32, i32
  }
  func.func @transform_2(%arg0: i32, %arg1: i32) -> (i32, i32) {
    %c0_i32 = arith.constant 0 : i32
    return %arg1, %arg0 : i32, i32
  }
  func.func @transform_3(%arg0: i32, %arg1: i32) -> (i32, i32) {
    %c0_i32 = arith.constant 0 : i32
    %c0_i32_0 = arith.constant 0 : i32
    return %c0_i32, %arg0 : i32, i32
  }
  func.func @transform_4(%arg0: i32, %arg1: i32) -> (i32, i32) {
    %c0_i32 = arith.constant 0 : i32
    return %arg1, %arg0 : i32, i32
  }
}

</mosaic_0001>

<bundles_post_ra>
// kernel: tpu_custom_call.1
= control target key start
LH: loop header
LB: loop body
LE: loop exit
PB: predicated region body
PF: predicated region fallthrough
CT: control target
= control target key end

     0   :  { %10 = vsyncpa [#allocation4], 0  ;;  %s233_s0 = inlined_call_operand.<no memory space> [shape: f32[1], index: 0, kind: input, shape index: {}]   ;;  %s234_s1 = inlined_call_operand.hbm [shape: f32[4,256], index: 1, kind: input, shape index: {}]   ;;  %s235_s2 = inlined_call_operand.hbm [shape: f32[4,256], index: 2, kind: input, shape index: {}]   ;;  %s236_s3 = inlined_call_operand.vmem [shape: f32[1,256], index: 3, kind: input, shape index: {}]   ;;  %s237_s4 = inlined_call_operand.hbm [shape: f32[4,256], index: 4, kind: output, shape index: {}]  }
   0x1   :  { %11 = vsyncpa [#allocation7], 0 }
   0x2   :  { %12 = vsyncpa [#allocation5], 0  ;;  %s163_s15 = smov [#allocation3]   ;;  %s164_s17 = smov [#allocation6]  }
   0x3   :  { %s21_s16 = sshll.u32 %s163_s15, 4  ;;  %s31_s18 = sshll.u32 %s164_s17, 4  ;;  %s22_s16 = int_to_ptr.vmem [resolvable:$true] %s21_s16  ;;  %s32_s18 = int_to_ptr.vmem [resolvable:$true] %s31_s18 }
   0x4   :  { %s91_s21 = scalar_lea.hbm %s234_s1, 128 }
   0x5   :  { %p92_p0 = scmp.ne.s32.totalorder %s234_s1, %s91_s21  ;;  %p95_p1 = scmp.lt.u32.totalorder %s91_s21, %s234_s1 }
   0x7   :  { %p97_p2 = pnand %p95_p1, %p92_p0 }
   0x9   :  { %100 = shalt.err (!%p97_p2)
}
   0xa   :  { %s101_s26 = scalar_lea.vmem %s22_s16, 128  ;;  %p106_p4 = scmp.lt.s32.totalorder %s22_s16, %s22_s16 }
   0xb   :  { %p102_p3 = scmp.ne.s32.totalorder %s22_s16, %s101_s26  ;;  %p107_p5 = scmp.lt.s32.totalorder %s101_s26, %s101_s26 }
   0xd   :  { %p108_p6 = por %p107_p5, %p106_p4 }
   0xf   :  { %p109_p7 = pnand %p108_p6, %p102_p3 }
  0x11   :  { %112 = shalt.err (!%p109_p7)
}
  0x12   :  { %24 = dma.hbm_to_vmem [thread:$0]  %s234_s1, 128, %s22_s16, [#allocation4]  }
  0x13   :  { %s113_s5 = scalar_lea.hbm %s235_s2, 128 }
  0x14   :  { %p114_p8 = scmp.ne.s32.totalorder %s235_s2, %s113_s5  ;;  %p117_p9 = scmp.lt.u32.totalorder %s113_s5, %s235_s2 }
  0x16   :  { %p119_p10 = pnand %p117_p9, %p114_p8 }
  0x18   :  { %122 = shalt.err (!%p119_p10)
}
  0x19   :  { %s123_s10 = scalar_lea.vmem %s32_s18, 128  ;;  %p128_p12 = scmp.lt.s32.totalorder %s32_s18, %s32_s18 }
  0x1a   :  { %p124_p11 = scmp.ne.s32.totalorder %s32_s18, %s123_s10  ;;  %p129_p13 = scmp.lt.s32.totalorder %s123_s10, %s123_s10 }
  0x1c   :  { %p130_p0 = por %p129_p13, %p128_p12 }
  0x1e   :  { %p131_p1 = pnand %p130_p0, %p124_p11 }
  0x20   :  { %134 = shalt.err (!%p131_p1)
}
  0x21   :  { %34 = dma.hbm_to_vmem [thread:$0]  %s235_s2, 128, %s32_s18, [#allocation7]  }
  0x22   :  { %157 = dma.done.wait [#allocation4], 128  }
  0x23   :  { %158 = vsyncadd [#allocation4], 4294967168 }
  0x24   :  { %159 = dma.done.wait [#allocation7], 128  }
  0x25   :  { %160 = vsyncadd [#allocation7], 4294967168  ;;  %v51_v0 = vlaneseq  ;;  %v47_v2 = vstv %s233_s0  ;;  %v44_v5 = vld [vmem:[#allocation3] sm:$0xff]  ;;  %v45_v6 = vld [vmem:[#allocation6] sm:$0xff]  ;;  %s165_s2 = smov [#allocation8]  }
  0x26   :  { %v46_v7 = vld [vmem:[%s236_s3] sm:$0x3]  ;;  %v49_v9 = vsub.f32 %v45_v6, %v44_v5  ;;  %s78_s16 = sshll.u32 %s165_s2, 4  ;;  %s79_s16 = int_to_ptr.vmem [resolvable:$true] %s78_s16 }
  0x27   :  { %v52_v1 = vshrl.u32 %v51_v0, 7  ;;  %v48_v8 = vmul.f32 %v47_v2, %v46_v7  ;;  %s135_s0 = scalar_lea.vmem %s79_s16, 128  ;;  %p140_p3 = scmp.lt.s32.totalorder %s79_s16, %s79_s16 }
  0x28   :  { %v62_v12 = vcombine.high %v49_v9, %v49_v9  ;;  %p136_p2 = scmp.ne.s32.totalorder %s79_s16, %s135_s0  ;;  %p141_p4 = scmp.lt.s32.totalorder %s135_s0, %s135_s0 }
  0x29   :  { %v53_v3 = vsub.s32 0, %v52_v1  ;;  %v57_v4 = vsub.s32 1, %v52_v1 }
  0x2a   :  { %p142_p5 = por %p141_p4, %p140_p3 }
  0x2b   :  { %v54_v10 = vrot.slane %v48_v8, %v53_v3  ;;  %v58_v11 = vrot.slane %v48_v8, %v57_v4 }
  0x2c   :  { %p143_p6 = pnand %p142_p5, %p136_p2 }
  0x2d   :  { %v64_v13 = vmul.f32 %v54_v10, %v49_v9  ;;  %v65_v14 = vmul.f32 %v62_v12, %v58_v11 }
  0x2f   :  { %v68_v15 = vcombine.low %v64_v13, %v65_v14 }
  0x31   :  { %v70_v16 = vadd.f32 %v68_v15, %v44_v5 }
  0x33   :  { %71 = vst [vmem:[#allocation8] sm:$0xff] %v70_v16 }
  0x34   :  { %146 = shalt.err (!%p143_p6)
}
  0x35   :  { %s147_s18 = scalar_lea.hbm %s237_s4, 128 }
  0x36   :  { %p148_p7 = scmp.ne.s32.totalorder %s237_s4, %s147_s18  ;;  %p151_p8 = scmp.lt.u32.totalorder %s147_s18, %s237_s4 }
  0x38   :  { %p153_p9 = pnand %p151_p8, %p148_p7 }
  0x3a   :  { %156 = shalt.err (!%p153_p9)
}
  0x3b   :  { %81 = dma.vmem_to_hbm [thread:$0]  %s79_s16, 128, %s237_s4, [#allocation5]  }
  0x3c   :  { %161 = dma.done.wait [#allocation5], 128  }
  0x3d   :  { %162 = vsyncadd [#allocation5], 4294967168 }
  0x3e   :  { %85 = vsyncpa [#allocation4], 1 }
  0x3f   :  { %86 = vsyncpa [#allocation7], 1 }
  0x40   :  { %87 = vsyncpa [#allocation5], 1 }

</bundles_post_ra>
